<compile_context>
chip_gen: v6e
topology: v6e:2x2x1
jax: 0.10.0
libtpu: 0.0.40
codegen_flags: <defaults>
</compile_context>

<pallas_src>
import jax
import jax.numpy as jnp
from jax.experimental import pallas as pl
from jax.experimental.pallas import tpu as pltpu


def _critic_kernel(s_ref, a_ref,
                   w1_ref, b1_ref,
                   w2_ref, w5_ref, b2_ref,
                   w3_ref, w6_ref, b3_ref,
                   q_ref):
    """Fused twin-Q forward on one batch tile.

    xu = cat([state, action], 1)                              # [tb, S+A]
    h  = relu(xu @ W1p + b1p)                                 # [tb, 2H] (both heads)
    g1 = relu(h[:, :H] @ W2 + b2) ; g2 = relu(h[:, H:] @ W5 + b5)
    q  = [g1 @ W3 + b3, g2 @ W6 + b6]                         # [tb, 2] (col0=q1, col1=q2)
    """
    wdt = w1_ref.dtype  # bf16 weights -> single-pass MXU; accumulate in f32

    # Layer 1: one K=(S+A) dot for both heads; concat happens in VMEM.
    xu = jnp.concatenate([s_ref[...], a_ref[...]], axis=1).astype(wdt)
    h = jnp.dot(xu, w1_ref[...], preferred_element_type=jnp.float32) + b1_ref[...]
    h = jnp.maximum(h, 0.0)

    # Layer 2: per-head HxH dots (no zero-padded block-diagonal).
    H = w2_ref.shape[0]
    h1 = h[:, :H].astype(wdt)
    h2 = h[:, H:].astype(wdt)
    g1 = jnp.dot(h1, w2_ref[...], preferred_element_type=jnp.float32) + b2_ref[:, :H]
    g2 = jnp.dot(h2, w5_ref[...], preferred_element_type=jnp.float32) + b2_ref[:, H:]
    g1 = jnp.maximum(g1, 0.0).astype(wdt)
    g2 = jnp.maximum(g2, 0.0).astype(wdt)

    # Layer 3: per-head Hx1 dots, packed into one lane-packed (tb, 2) store.
    q1 = jnp.dot(g1, w3_ref[...], preferred_element_type=jnp.float32)
    q2 = jnp.dot(g2, w6_ref[...], preferred_element_type=jnp.float32)
    q = jnp.concatenate([q1, q2], axis=1) + b3_ref[...]
    q_ref[...] = q.astype(q_ref.dtype)


def pack_critic_params(params, weight_dtype=jnp.bfloat16):
    """Pack the 6 per-layer (w, b) pairs into the fused twin-head layout.

    Weights come in as [in, out] float32; they are cast to `weight_dtype`
    (bf16 by default) for single-pass MXU matmuls.  Biases stay float32 (they
    are added to the f32 accumulator inside the kernel).
    """
    f32 = jnp.float32
    return {
        # Layer 1: heads packed along the output axis -> one [S+A, 2H] weight.
        "w1": jnp.concatenate([params["w1"], params["w4"]], axis=1).astype(weight_dtype),
        "b1": jnp.concatenate([params["b1"], params["b4"]], axis=1).astype(f32),
        # Layer 2: per-head [H, H] weights (no zero-padded block-diagonal).
        "w2": params["w2"].astype(weight_dtype),
        "w5": params["w5"].astype(weight_dtype),
        "b2": jnp.concatenate([params["b2"], params["b5"]], axis=1).astype(f32),
        # Layer 3: per-head [H, 1] weights; biases packed into one [1, 2] row.
        "w3": params["w3"].astype(weight_dtype),
        "w6": params["w6"].astype(weight_dtype),
        "b3": jnp.concatenate([params["b3"], params["b6"]], axis=1).astype(f32),
    }


def _pick_batch_tile(batch, hidden):
    """Whole batch in one grid step unless clearly MXU-compute-bound.

    At realistic SAC sizes (B<=1024, H=256) the kernel is weight-bandwidth /
    fixed-overhead bound: extra grid steps only add ~0.35us each on single-TC
    v5e/v6e, and on v7x each TensorCore would re-DMA the resident weights.
    Only split the batch in two (so the 'parallel' grid axis can shard across
    both v7x TensorCores) when the MXU work clearly dominates weight fetch.
    """
    if batch >= 2048 and hidden >= 256 and batch % 16 == 0:
        return batch // 2
    return batch


def critic_forward(state, action, packed):
    """Pallas implementation of Critic.forward. Returns (q1, q2), each [B, 1]."""
    B, S = state.shape
    A = action.shape[1]
    H = packed["w2"].shape[0]
    tb = _pick_batch_tile(B, H)
    grid = (B // tb,)

    batch_map = lambda i: (i, 0)   # tile over batch rows
    fixed_map = lambda i: (0, 0)   # weights/biases resident across the grid

    weight_bytes = sum(int(packed[k].size) * packed[k].dtype.itemsize
                       for k in ("w1", "w2", "w5", "w3", "w6"))
    bias_bytes = sum(int(packed[k].size) * packed[k].dtype.itemsize
                     for k in ("b1", "b2", "b3"))

    # Resident weights don't need the default 2-deep pipeline buffering; only
    # bother overriding it when the footprint is big enough to threaten v7x's
    # 64 MiB VMEM (tiny nets skip the kwarg entirely).
    single_buffer_weights = 2 * weight_bytes > 24 * 1024 * 1024

    def w_spec(shape):
        if single_buffer_weights:
            return pl.BlockSpec(shape, fixed_map, pipeline_mode=pl.Buffered(1))
        return pl.BlockSpec(shape, fixed_map)

    # Non-block-diag, per-head FLOP count:
    #   layer1: 2*B*(S+A)*2H, layer2: 2*B*2*H*H, layer3: 2*B*2*H
    flops = 2 * B * ((S + A) * 2 * H + 2 * H * H + 2 * H)
    bytes_accessed = (int(state.size) * state.dtype.itemsize
                      + int(action.size) * action.dtype.itemsize
                      + B * 2 * 4                     # (B, 2) f32 output
                      + weight_bytes + bias_bytes)

    q = pl.pallas_call(
        _critic_kernel,
        out_shape=jax.ShapeDtypeStruct((B, 2), jnp.float32),
        grid=grid,
        in_specs=[
            pl.BlockSpec((tb, S), batch_map),
            pl.BlockSpec((tb, A), batch_map),
            w_spec(packed["w1"].shape),
            w_spec(packed["b1"].shape),
            w_spec(packed["w2"].shape),
            w_spec(packed["w5"].shape),
            w_spec(packed["b2"].shape),
            w_spec(packed["w3"].shape),
            w_spec(packed["w6"].shape),
            w_spec(packed["b3"].shape),
        ],
        out_specs=pl.BlockSpec((tb, 2), batch_map),
        compiler_params=pltpu.CompilerParams(
            dimension_semantics=("parallel",)),
        cost_estimate=pl.CostEstimate(
            flops=int(flops), transcendentals=0,
            bytes_accessed=int(bytes_accessed)),
    )(state, action,
      packed["w1"], packed["b1"],
      packed["w2"], packed["w5"], packed["b2"],
      packed["w3"], packed["w6"], packed["b3"])

    return q[:, 0:1], q[:, 1:2]


def init_critic_params(key, state_dim, action_dim, hidden_dim):
    """Deterministic synthetic init (xavier-uniform-like weights, zero biases),
    matching the layer shapes of the PyTorch Critic.  Weights are stored as
    [in, out] so the forward computes x @ W + b."""
    d_in = state_dim + action_dim
    dims = [
        (d_in, hidden_dim),        # linear1
        (hidden_dim, hidden_dim),  # linear2
        (hidden_dim, 1),           # linear3
        (d_in, hidden_dim),        # linear4
        (hidden_dim, hidden_dim),  # linear5
        (hidden_dim, 1),           # linear6
    ]
    params = {}
    keys = jax.random.split(key, len(dims))
    for i, ((fan_in, fan_out), k) in enumerate(zip(dims, keys), start=1):
        limit = (6.0 / (fan_in + fan_out)) ** 0.5
        params[f"w{i}"] = jax.random.uniform(
            k, (fan_in, fan_out), jnp.float32, minval=-limit, maxval=limit)
        params[f"b{i}"] = jnp.zeros((1, fan_out), jnp.float32)
    return params


def critic_reference_f32(state, action, params):
    """Plain-JAX float32 reference (matches the PyTorch module exactly)."""
    xu = jnp.concatenate([state, action], axis=1)
    x1 = jax.nn.relu(xu @ params["w1"] + params["b1"])
    x1 = jax.nn.relu(x1 @ params["w2"] + params["b2"])
    q1 = x1 @ params["w3"] + params["b3"]
    x2 = jax.nn.relu(xu @ params["w4"] + params["b4"])
    x2 = jax.nn.relu(x2 @ params["w5"] + params["b5"])
    q2 = x2 @ params["w6"] + params["b6"]
    return q1, q2


def critic_reference_mixed(state, action, params):
    """Plain-JAX reference using the SAME bf16-weight / f32-accumulate recipe
    as the kernel (isolates kernel bugs from bf16 quantization error)."""
    bf, f32 = jnp.bfloat16, jnp.float32

    def lin(x, w, b):
        return jnp.dot(x.astype(bf), w.astype(bf),
                       preferred_element_type=f32) + b

    xu = jnp.concatenate([state, action], axis=1)
    x1 = jax.nn.relu(lin(xu, params["w1"], params["b1"]))
    x1 = jax.nn.relu(lin(x1, params["w2"], params["b2"]))
    q1 = lin(x1, params["w3"], params["b3"])
    x2 = jax.nn.relu(lin(xu, params["w4"], params["b4"]))
    x2 = jax.nn.relu(lin(x2, params["w5"], params["b5"]))
    q2 = lin(x2, params["w6"], params["b6"])
    return q1, q2


if __name__ == "__main__":
    # Small shapes consistent with the module: batch=8, state_dim=12,
    # action_dim=4, hidden_dim=32.
    B, STATE_DIM, ACTION_DIM, HIDDEN = 8, 12, 4, 32

    key = jax.random.PRNGKey(0)
    k_params, k_state, k_action = jax.random.split(key, 3)

    params = init_critic_params(k_params, STATE_DIM, ACTION_DIM, HIDDEN)
    packed = pack_critic_params(params)

    state = jax.random.normal(k_state, (B, STATE_DIM), jnp.float32)
    action = jax.random.normal(k_action, (B, ACTION_DIM), jnp.float32)

    q1, q2 = critic_forward(state, action, packed)
    jax.block_until_ready((q1, q2))

    assert q1.shape == (B, 1) and q2.shape == (B, 1)

    # Tight check vs a reference using the same bf16-weight / f32-acc math.
    q1_m, q2_m = critic_reference_mixed(state, action, params)
    assert jnp.allclose(q1, q1_m, atol=1e-4, rtol=1e-4)
    assert jnp.allclose(q2, q2_m, atol=1e-4, rtol=1e-4)

    # Loose check vs the pure-f32 reference (bf16 weights -> ~1e-3 rel error).
    q1_r, q2_r = critic_reference_f32(state, action, params)
    assert jnp.allclose(q1, q1_r, atol=5e-2, rtol=5e-2)
    assert jnp.allclose(q2, q2_r, atol=5e-2, rtol=5e-2)

    print("KERNEL_OK")
</pallas_src>

<mosaic_0001>
module attributes {stable_mosaic.version = 11 : i64} {
  func.func @_critic_kernel(%arg0: i32, %arg1: memref<8x12xf32, #tpu.memory_space<vmem>>, %arg2: memref<8x4xf32, #tpu.memory_space<vmem>>, %arg3: memref<16x64xbf16, #tpu.memory_space<vmem>>, %arg4: memref<1x64xf32, #tpu.memory_space<vmem>>, %arg5: memref<32x32xbf16, #tpu.memory_space<vmem>>, %arg6: memref<32x32xbf16, #tpu.memory_space<vmem>>, %arg7: memref<1x64xf32, #tpu.memory_space<vmem>>, %arg8: memref<32x1xbf16, #tpu.memory_space<vmem>>, %arg9: memref<32x1xbf16, #tpu.memory_space<vmem>>, %arg10: memref<1x2xf32, #tpu.memory_space<vmem>>, %arg11: memref<8x2xf32, #tpu.memory_space<vmem>>) attributes {dimension_semantics = [#tpu.dimension_semantics<parallel>], iteration_bounds = array<i64: 1>, scalar_prefetch = 0 : i64, scratch_operands = 0 : i64, tpu.core_type = #tpu.core_type<tc>, window_params = [{transform_indices = @transform_0, window_bounds = array<i64: 8, 12>}, {transform_indices = @transform_1, window_bounds = array<i64: 8, 4>}, {pipeline_mode = #tpu.pipeline_mode<synchronous>, transform_indices = @transform_2, window_bounds = array<i64: 16, 64>}, {pipeline_mode = #tpu.pipeline_mode<synchronous>, transform_indices = @transform_3, window_bounds = array<i64: 1, 64>}, {pipeline_mode = #tpu.pipeline_mode<synchronous>, transform_indices = @transform_4, window_bounds = array<i64: 32, 32>}, {pipeline_mode = #tpu.pipeline_mode<synchronous>, transform_indices = @transform_5, window_bounds = array<i64: 32, 32>}, {pipeline_mode = #tpu.pipeline_mode<synchronous>, transform_indices = @transform_6, window_bounds = array<i64: 1, 64>}, {pipeline_mode = #tpu.pipeline_mode<synchronous>, transform_indices = @transform_7, window_bounds = array<i64: 32, 1>}, {pipeline_mode = #tpu.pipeline_mode<synchronous>, transform_indices = @transform_8, window_bounds = array<i64: 32, 1>}, {pipeline_mode = #tpu.pipeline_mode<synchronous>, transform_indices = @transform_9, window_bounds = array<i64: 1, 2>}, {transform_indices = @transform_10, window_bounds = array<i64: 8, 2>}]} {
    %c0 = arith.constant 0 : index
    %c0_0 = arith.constant 0 : index
    %0 = vector.load %arg1[%c0, %c0_0] : memref<8x12xf32, #tpu.memory_space<vmem>>, vector<8x12xf32>
    %c0_1 = arith.constant 0 : index
    %c0_2 = arith.constant 0 : index
    %1 = vector.load %arg2[%c0_1, %c0_2] : memref<8x4xf32, #tpu.memory_space<vmem>>, vector<8x4xf32>
    %2 = tpu.concatenate %0, %1 in 1 : vector<8x12xf32>, vector<8x4xf32> -> vector<8x16xf32>
    %3 = arith.truncf %2 : vector<8x16xf32> to vector<8x16xbf16>
    %c0_3 = arith.constant 0 : index
    %c0_4 = arith.constant 0 : index
    %4 = vector.load %arg3[%c0_3, %c0_4] : memref<16x64xbf16, #tpu.memory_space<vmem>>, vector<16x64xbf16>
    %cst = arith.constant dense<0.000000e+00> : vector<8x64xf32>
    %5 = tpu.matmul %3, %4, %cst {dimension_numbers = #tpu.dot_dimension_numbers<[1], [0], [0], [1], [0, 0, 1, 1], [], []>} : vector<8x16xbf16>, vector<16x64xbf16>, vector<8x64xf32> -> vector<8x64xf32>
    %c0_5 = arith.constant 0 : index
    %c0_6 = arith.constant 0 : index
    %6 = vector.load %arg4[%c0_5, %c0_6] : memref<1x64xf32, #tpu.memory_space<vmem>>, vector<1x64xf32>
    %7 = vector.broadcast %6 : vector<1x64xf32> to vector<8x64xf32>
    %8 = arith.addf %5, %7 : vector<8x64xf32>
    %cst_7 = arith.constant 0.000000e+00 : f32
    %9 = vector.broadcast %cst_7 : f32 to vector<8x64xf32>
    %10 = arith.maximumf %8, %9 : vector<8x64xf32>
    %11 = vector.extract_strided_slice %10 {offsets = [0, 0], sizes = [8, 32], strides = [1, 1]} : vector<8x64xf32> to vector<8x32xf32>
    %12 = arith.truncf %11 : vector<8x32xf32> to vector<8x32xbf16>
    %13 = vector.extract_strided_slice %10 {offsets = [0, 32], sizes = [8, 32], strides = [1, 1]} : vector<8x64xf32> to vector<8x32xf32>
    %14 = arith.truncf %13 : vector<8x32xf32> to vector<8x32xbf16>
    %c0_8 = arith.constant 0 : index
    %c0_9 = arith.constant 0 : index
    %15 = vector.load %arg5[%c0_8, %c0_9] : memref<32x32xbf16, #tpu.memory_space<vmem>>, vector<32x32xbf16>
    %cst_10 = arith.constant dense<0.000000e+00> : vector<8x32xf32>
    %16 = tpu.matmul %12, %15, %cst_10 {dimension_numbers = #tpu.dot_dimension_numbers<[1], [0], [0], [1], [0, 0, 1, 1], [], []>} : vector<8x32xbf16>, vector<32x32xbf16>, vector<8x32xf32> -> vector<8x32xf32>
    %c0_11 = arith.constant 0 : index
    %c0_12 = arith.constant 0 : index
    %17 = vector.load %arg7[%c0_11, %c0_12] : memref<1x64xf32, #tpu.memory_space<vmem>>, vector<1x32xf32>
    %18 = vector.broadcast %17 : vector<1x32xf32> to vector<8x32xf32>
    %19 = arith.addf %16, %18 : vector<8x32xf32>
    %c0_13 = arith.constant 0 : index
    %c0_14 = arith.constant 0 : index
    %20 = vector.load %arg6[%c0_13, %c0_14] : memref<32x32xbf16, #tpu.memory_space<vmem>>, vector<32x32xbf16>
    %cst_15 = arith.constant dense<0.000000e+00> : vector<8x32xf32>
    %21 = tpu.matmul %14, %20, %cst_15 {dimension_numbers = #tpu.dot_dimension_numbers<[1], [0], [0], [1], [0, 0, 1, 1], [], []>} : vector<8x32xbf16>, vector<32x32xbf16>, vector<8x32xf32> -> vector<8x32xf32>
    %c0_16 = arith.constant 0 : index
    %c32 = arith.constant 32 : index
    %22 = vector.load %arg7[%c0_16, %c32] : memref<1x64xf32, #tpu.memory_space<vmem>>, vector<1x32xf32>
    %23 = vector.broadcast %22 : vector<1x32xf32> to vector<8x32xf32>
    %24 = arith.addf %21, %23 : vector<8x32xf32>
    %cst_17 = arith.constant 0.000000e+00 : f32
    %25 = vector.broadcast %cst_17 : f32 to vector<8x32xf32>
    %26 = arith.maximumf %19, %25 : vector<8x32xf32>
    %27 = arith.truncf %26 : vector<8x32xf32> to vector<8x32xbf16>
    %cst_18 = arith.constant 0.000000e+00 : f32
    %28 = vector.broadcast %cst_18 : f32 to vector<8x32xf32>
    %29 = arith.maximumf %24, %28 : vector<8x32xf32>
    %30 = arith.truncf %29 : vector<8x32xf32> to vector<8x32xbf16>
    %c0_19 = arith.constant 0 : index
    %c0_20 = arith.constant 0 : index
    %31 = vector.load %arg8[%c0_19, %c0_20] : memref<32x1xbf16, #tpu.memory_space<vmem>>, vector<32x1xbf16>
    %cst_21 = arith.constant dense<0.000000e+00> : vector<8x1xf32>
    %32 = tpu.matmul %27, %31, %cst_21 {dimension_numbers = #tpu.dot_dimension_numbers<[1], [0], [0], [1], [0, 0, 1, 1], [], []>} : vector<8x32xbf16>, vector<32x1xbf16>, vector<8x1xf32> -> vector<8x1xf32>
    %c0_22 = arith.constant 0 : index
    %c0_23 = arith.constant 0 : index
    %33 = vector.load %arg9[%c0_22, %c0_23] : memref<32x1xbf16, #tpu.memory_space<vmem>>, vector<32x1xbf16>
    %cst_24 = arith.constant dense<0.000000e+00> : vector<8x1xf32>
    %34 = tpu.matmul %30, %33, %cst_24 {dimension_numbers = #tpu.dot_dimension_numbers<[1], [0], [0], [1], [0, 0, 1, 1], [], []>} : vector<8x32xbf16>, vector<32x1xbf16>, vector<8x1xf32> -> vector<8x1xf32>
    %35 = tpu.concatenate %32, %34 in 1 : vector<8x1xf32>, vector<8x1xf32> -> vector<8x2xf32>
    %c0_25 = arith.constant 0 : index
    %c0_26 = arith.constant 0 : index
    %36 = vector.load %arg10[%c0_25, %c0_26] : memref<1x2xf32, #tpu.memory_space<vmem>>, vector<1x2xf32>
    %37 = vector.broadcast %36 : vector<1x2xf32> to vector<8x2xf32>
    %38 = arith.addf %35, %37 : vector<8x2xf32>
    %c0_27 = arith.constant 0 : index
    %c0_28 = arith.constant 0 : index
    %39 = vector.load %arg11[%c0_27, %c0_28] : memref<8x2xf32, #tpu.memory_space<vmem>>, vector<8x2xf32>
    tpu.vector_store %arg11[%c0_27, %c0_28], %38 {strides = array<i32>} : memref<8x2xf32, #tpu.memory_space<vmem>>, vector<8x2xf32>,
    return
  }
  func.func @transform_0(%arg0: i32) -> (i32, i32) {
    %c0_i32 = arith.constant 0 : i32
    %c0_i32_0 = arith.constant 0 : i32
    return %arg0, %c0_i32 : i32, i32
  }
  func.func @transform_1(%arg0: i32) -> (i32, i32) {
    %c0_i32 = arith.constant 0 : i32
    %c0_i32_0 = arith.constant 0 : i32
    return %arg0, %c0_i32 : i32, i32
  }
  func.func @transform_2(%arg0: i32) -> (i32, i32) {
    %c0_i32 = arith.constant 0 : i32
    %c0_i32_0 = arith.constant 0 : i32
    %c0_i32_1 = arith.constant 0 : i32
    return %c0_i32, %c0_i32_0 : i32, i32
  }
  func.func @transform_3(%arg0: i32) -> (i32, i32) {
    %c0_i32 = arith.constant 0 : i32
    %c0_i32_0 = arith.constant 0 : i32
    %c0_i32_1 = arith.constant 0 : i32
    return %c0_i32, %c0_i32_0 : i32, i32
  }
  func.func @transform_4(%arg0: i32) -> (i32, i32) {
    %c0_i32 = arith.constant 0 : i32
    %c0_i32_0 = arith.constant 0 : i32
    %c0_i32_1 = arith.constant 0 : i32
    return %c0_i32, %c0_i32_0 : i32, i32
  }
  func.func @transform_5(%arg0: i32) -> (i32, i32) {
    %c0_i32 = arith.constant 0 : i32
    %c0_i32_0 = arith.constant 0 : i32
    %c0_i32_1 = arith.constant 0 : i32
    return %c0_i32, %c0_i32_0 : i32, i32
  }
  func.func @transform_6(%arg0: i32) -> (i32, i32) {
    %c0_i32 = arith.constant 0 : i32
    %c0_i32_0 = arith.constant 0 : i32
    %c0_i32_1 = arith.constant 0 : i32
    return %c0_i32, %c0_i32_0 : i32, i32
  }
  func.func @transform_7(%arg0: i32) -> (i32, i32) {
    %c0_i32 = arith.constant 0 : i32
    %c0_i32_0 = arith.constant 0 : i32
    %c0_i32_1 = arith.constant 0 : i32
    return %c0_i32, %c0_i32_0 : i32, i32
  }
  func.func @transform_8(%arg0: i32) -> (i32, i32) {
    %c0_i32 = arith.constant 0 : i32
    %c0_i32_0 = arith.constant 0 : i32
    %c0_i32_1 = arith.constant 0 : i32
    return %c0_i32, %c0_i32_0 : i32, i32
  }
  func.func @transform_9(%arg0: i32) -> (i32, i32) {
    %c0_i32 = arith.constant 0 : i32
    %c0_i32_0 = arith.constant 0 : i32
    %c0_i32_1 = arith.constant 0 : i32
    return %c0_i32, %c0_i32_0 : i32, i32
  }
  func.func @transform_10(%arg0: i32) -> (i32, i32) {
    %c0_i32 = arith.constant 0 : i32
    %c0_i32_0 = arith.constant 0 : i32
    return %arg0, %c0_i32 : i32, i32
  }
}

</mosaic_0001>

<bundles_post_ra>
// kernel: tpu_custom_call.1
= control target key start
LH: loop header
LB: loop body
LE: loop exit
PB: predicated region body
PF: predicated region fallthrough
CT: control target
= control target key end

     0   :  { %v463_v1 = vmov 0.0   ;;  %vm464_vm0 = vmmov 0   ;;  %s465_s15 = smov 12   ;;  %vm42_vm1 = vcmask 97280   ;;  %vm60_vm2 = vcmask 130048   ;;  %s466_s27 = smov 96   ;;  %s577_s1 = inlined_call_operand.vmem [shape: f32[8,4], index: 1, kind: input, shape index: {}]   ;;  %s578_s2 = inlined_call_operand.vmem [shape: bf16[16,64], index: 2, kind: input, shape index: {}]   ;;  %s579_s0 = inlined_call_operand.vmem [shape: f32[8,12], index: 0, kind: input, shape index: {}]   ;;  %s580_s4 = inlined_call_operand.vmem [shape: bf16[32,32], index: 4, kind: input, shape index: {}]   ;;  %s581_s5 = inlined_call_operand.vmem [shape: bf16[32,32], index: 5, kind: input, shape index: {}]   ;;  %s582_s6 = inlined_call_operand.vmem [shape: f32[1,64], index: 6, kind: input, shape index: {}]   ;;  %s583_s3 = inlined_call_operand.vmem [shape: f32[1,64], index: 3, kind: input, shape index: {}]   ;;  %s584_s7 = inlined_call_operand.vmem [shape: bf16[32,1], index: 7, kind: input, shape index: {}]   ;;  %s585_s8 = inlined_call_operand.vmem [shape: bf16[32,1], index: 8, kind: input, shape index: {}]   ;;  %s586_s9 = inlined_call_operand.vmem [shape: f32[1,2], index: 9, kind: input, shape index: {}]   ;;  %s587_s10 = inlined_call_operand.vmem [shape: f32[8,2], index: 10, kind: output, shape index: {}]  }
   0x1   :  { %v37_v0 = vld [vmem:[%s577_s1] sm:$0xff]  ;;  %411 = vmatprep.subr.bf16.mxu0 %v463_v1  ;;  %413 = vmatprep.mubr.msk.bf16.mxu0 %vm464_vm0, %v463_v1  ;;  %v455_v7 = vld [vmem:[%s580_s4 + $0x8] sm:$0xff]   ;;  %vm129_vm3 = vcmask 261120   ;;  %vm364_vm4 = vcmask 7168   ;;  %vm374_vm5 = vcmask 15360  }
   0x2   :  { %39 = vrot.lane.b32.xlu0 %v37_v0, %s465_s15  ;;  %v454_v2 = vld [vmem:[%s578_s2] sm:$0xff]   ;;  %417 = vmatprep.subr.bf16.mxu1 %v463_v1  ;;  %v457_v9 = vld [vmem:[%s581_s5 + $0x8] sm:$0xff]  }
   0x3   :  { %421 = vmatprep.mubr.msk.bf16.mxu1 %vm464_vm0, %v463_v1  ;;  %412 = vmatpush3.bf16.msra.mxu0 %v454_v2  ;;  %v36_v3 = vld [vmem:[%s579_s0] sm:$0xff]  ;;  %v459_v20 = vld [vmem:[%s584_s7 + $0x8] sm:$0xff]  }
   0x4   :  { %425 = vmatprep.subr.bf16.mxu0 %v463_v1  ;;  %418 = vmatpush3.bf16.msra.mxu1 %v455_v7  ;;  %v456_v8 = vld [vmem:[%s580_s4] sm:$0xff]   ;;  %v461_v22 = vld [vmem:[%s585_s8 + $0x8] sm:$0xff]  }
   0x5   :  { %419 = vmatprep.subr.bf16.mxu1 %v463_v1  ;;  %v458_v10 = vld [vmem:[%s581_s5] sm:$0xff]  }
   0x6   :  { %v383_v11 = vld [vmem:[%s582_s6] ss:$0 sm:$0xff] }
   0x7   :  { %192 = vrot.lane.b32.xlu1 %v383_v11, %s466_s27  ;;  %v380_v12 = vld [vmem:[%s583_s3] ss:$0 sm:$0xff] }
   0x8   :  { %420 = vmatpush3.bf16.msra.mxu1 %v456_v8  ;;  %v460_v21 = vld [vmem:[%s584_s7] sm:$0xff]   ;;  %s467_s7 = smov 1  }
   0x9   :  { %433 = vmatprep.subr.bf16.mxu1 %v463_v1  ;;  %v462_v24 = vld [vmem:[%s585_s8] sm:$0xff]  }
   0xa   :  { %v396_v48 = vld [vmem:[%s586_s9] ss:$0 sm:$0xff] }
  0x74   :  { %v40_v4 = vpop.permute.xlu0 %39 }
  0x75   :  { %v43_v5 = vsel %vm42_vm1, %v36_v3, %v40_v4 }
  0x76   :  { %v44_v6 = vpack.c.bf16 %v43_v5, %v43_v5 }
  0x78   :  { %414 = vmatmul.mubr.msk.bf16.vlgmr.msra.gmra.mxu0 %vm60_vm2, %v44_v6 }
  0x79   :  { %429 = vmatprep.mubr.msk.bf16.mxu0 %vm464_vm0, %v463_v1  ;;  %426 = vmatpush3.bf16.msra.mxu0 %v457_v9  ;;  %v193_v32 = vpop.permute.xlu1 %192 }
  0x7a   :  { %427 = vmatprep.subr.bf16.mxu0 %v463_v1 }
  0x7d   :  { %428 = vmatpush3.bf16.msra.mxu0 %v458_v10 }
  0x7e   :  { %441 = vmatprep.subr.bf16.mxu0 %v463_v1 }
 0x138   :  { %v98_v13 = vpop.f32.mrf.mxu0 }
 0x139   :  { %v99_v14 = vadd.f32 %v380_v12, %v98_v13 }
 0x13a   :  { %v415_v15 = vpop.f32.mrf.mxu0 }
 0x13b   :  { %v104_v16 = vmax.f32 %v99_v14, 0.0 }
 0x13c   :  { %v101_v17 = vpop.f32.mrf.mxu0 }
 0x13d   :  { %v105_v18 = vpack.c.bf16 %v104_v16, %v104_v16 }
 0x13e   :  { %v416_v19 = vpop.f32.mrf.mxu0 }
 0x13f   :  { %178 = vrot.lane.b32.xlu0 %v105_v18, %s466_s27  ;;  %422 = vmatmul.mubr.msk.bf16.vlgmr.msra.gmra.mxu1 %vm129_vm3, %v105_v18 }
 0x140   :  { %437 = vmatprep.mubr.msk.bf16.mxu1 %vm464_vm0, %v463_v1  ;;  %434 = vmatpush3.bf16.msra.mxu1 %v459_v20 }
 0x141   :  { %435 = vmatprep.subr.bf16.mxu1 %v463_v1 }
 0x144   :  { %436 = vmatpush3.bf16.msra.mxu1 %v460_v21 }
 0x1b1   :  { %v179_v23 = vpop.permute.xlu0 %178 }
 0x1b2   :  { %430 = vmatmul.mubr.msk.bf16.vlgmr.msra.gmra.mxu0 %vm129_vm3, %v179_v23 }
 0x1b3   :  { %442 = vmatpush3.bf16.msra.mxu0 %v461_v22  ;;  %445 = vmatprep.mubr.msk.bf16.mxu0 %vm464_vm0, %v463_v1 }
 0x1b4   :  { %443 = vmatprep.subr.bf16.mxu0 %v463_v1 }
 0x1b7   :  { %444 = vmatpush3.bf16.msra.mxu0 %v462_v24 }
 0x1ff   :  { %v167_v25 = vpop.f32.mrf.mxu1 }
 0x200   :  { %v168_v26 = vadd.f32 %v383_v11, %v167_v25 }
 0x201   :  { %v423_v27 = vpop.f32.mrf.mxu1 }
 0x202   :  { %v238_v28 = vmax.f32 %v168_v26, 0.0 }
 0x203   :  { %v170_v29 = vpop.f32.mrf.mxu1 }
 0x204   :  { %v239_v30 = vpack.c.bf16 %v238_v28, %v238_v28 }
 0x205   :  { %v424_v31 = vpop.f32.mrf.mxu1 }
 0x206   :  { %438 = vmatmul.mubr.msk.bf16.vlgmr.msra.gmra.mxu1 %vm129_vm3, %v239_v30 }
 0x272   :  { %v232_v33 = vpop.f32.mrf.mxu0 }
 0x273   :  { %v233_v34 = vadd.f32 %v232_v33, %v193_v32 }
 0x274   :  { %v431_v35 = vpop.f32.mrf.mxu0 }
 0x275   :  { %v240_v36 = vmax.f32 %v233_v34, 0.0 }
 0x276   :  { %v235_v37 = vpop.f32.mrf.mxu0 }
 0x277   :  { %v241_v38 = vpack.c.bf16 %v240_v36, %v240_v36 }
 0x278   :  { %v432_v39 = vpop.f32.mrf.mxu0 }
 0x279   :  { %446 = vmatmul.mubr.msk.bf16.vlgmr.msra.gmra.mxu0 %vm129_vm3, %v241_v38 }
 0x2c6   :  { %v295_v40 = vpop.f32.mrf.mxu1 }
 0x2c8   :  { %v439_v41 = vpop.f32.mrf.mxu1 }
 0x2ca   :  { %v298_v42 = vpop.f32.mrf.mxu1 }
 0x2cc   :  { %v440_v43 = vpop.f32.mrf.mxu1 }
 0x339   :  { %v354_v44 = vpop.f32.mrf.mxu0 }
 0x33a   :  { %361 = vrot.lane.b32.xlu1 %v354_v44, %s467_s7 }
 0x33b   :  { %v447_v45 = vpop.f32.mrf.mxu0 }
 0x33d   :  { %v357_v46 = vpop.f32.mrf.mxu0 }
 0x33f   :  { %v448_v47 = vpop.f32.mrf.mxu0 }
 0x3ac   :  { %v362_v49 = vpop.permute.xlu1 %361 }
 0x3ad   :  { %v365_v50 = vsel %vm364_vm4, %v295_v40, %v362_v49 }
 0x3ae   :  { %v373_v51 = vadd.f32 %v396_v48, %v365_v50 }
 0x3b0   :  { %375 = vst.msk [vmem:[%s587_s10] sm:$0xff] %vm374_vm5, %v373_v51 }

</bundles_post_ra>
